<compile_context>
chip_gen: v5e
topology: v5e:2x2
jax: 0.10.0
libtpu: 0.0.40
codegen_flags: <defaults>
</compile_context>

<pallas_src>
import jax
import jax.numpy as jnp
import numpy as np
from jax.experimental import pallas as pl
from jax.experimental.pallas import tpu as pltpu

LANE = 128
SUBLANE = 8


def _round_up(x, m):
    return (x + m - 1) // m * m


def _cdiv(a, b):
    return -(-a // b)


def _pick_row_tile(H, Wx, TCO):
    """Rows per output tile.

    Target matmul M = TH * Wx ~ 512 (>=256): amortizes the ~0.35us per-grid-step
    overhead while keeping the f32 register accumulator (M x TCO) near the vreg
    budget.  H is padded up to TH * n_rows, so TH never decays to 1 just because
    H has no convenient divisor.
    """
    m_target = 512 if TCO <= 128 else 256
    th = max(1, min(m_target // Wx, H))
    n_rows = _cdiv(H, th)
    th = _cdiv(H, n_rows)          # rebalance: minimizes padded rows
    return th, n_rows


def _masked_conv_kernel(x_ref, w_ref, b_ref, o_ref):
    """One (image, cout-tile, row-tile) grid step of the masked 'same' conv.

    x_ref : (1, Hp, Wx, Kc)      compute dtype, zero padded (halo + lanes); full
                                 image, resident across the inner grid axes
    w_ref : (KH, KWk, Kc, TCO)   compute dtype, pre-masked (KWk == 1 when kw is
                                 folded into the contraction dim Kc)
    b_ref : (1, TCO)             f32, pre-masked bias
    o_ref : (1, TH, Wo, TCO)     output row tile (Wo <= Wx; halo cols dropped)
    """
    _, TH, Wo, TCO = o_ref.shape
    KH, KWk, Kc, _ = w_ref.shape
    Wx = x_ref.shape[2]
    M = TH * Wx

    row0 = pl.program_id(2) * TH           # top input row of this tile's window
    acc = None                              # f32 register accumulator
    for kh in range(KH):
        # Aligned full-width row window: the dynamic offset is on a non-minor dim
        # and the reshape is layout-preserving (Wx % 8 == 0) -> no relayout copy.
        rows = x_ref[:, pl.ds(row0 + kh, TH), :, :].reshape(M, Kc)
        for kw in range(KWk):
            prod = jnp.dot(rows, w_ref[kh, kw],
                           preferred_element_type=jnp.float32)
            if kw:
                # Shift the f32 product (jnp.roll semantics: y[i] = x[i + kw]) so
                # output column w picks up input column w + kw.  Sublane rotation
                # on the idle XLU; wrapped columns land at >= W and are dropped.
                prod = pltpu.roll(prod, shift=M - kw, axis=0)
            # Bias fused into the first tap -> no separate epilogue pass.
            acc = (prod + b_ref[...]) if acc is None else (acc + prod)

    out = acc.reshape(TH, Wx, TCO)[:, :Wo, :]
    o_ref[...] = out.reshape(1, TH, Wo, TCO).astype(o_ref.dtype)


def conv2d_masked(x_nchw, weight_oihw, bias, weight_mask, bias_mask=None, *,
                  stride=(1, 1), padding=(1, 1), dilation=(1, 1), groups=1,
                  compute_dtype=jnp.bfloat16):
    """Pallas forward for Conv2dMasked (NCHW in / NCHW out, like PyTorch).

    compute_dtype: MXU operand dtype.  bf16 (default) halves HBM/VMEM traffic and
    matches MXU native precision; accumulation is always f32.  Pass jnp.float32
    for bit-closer parity with PyTorch's f32 conv2d.
    """
    stride = (stride, stride) if isinstance(stride, int) else tuple(stride)
    padding = (padding, padding) if isinstance(padding, int) else tuple(padding)
    dilation = (dilation, dilation) if isinstance(dilation, int) else tuple(dilation)

    Cout, Cin_w, KH, KW = weight_oihw.shape
    N, Cin, H, W = x_nchw.shape

    # Supported configuration (common ResNet-style 'same' conv).
    assert groups == 1 and dilation == (1, 1), "only groups=1, dilation=1"
    assert stride == (1, 1), "only stride=1 supported"
    assert KH % 2 == 1 and KW % 2 == 1, "only odd kernel sizes supported"
    assert padding == (KH // 2, KW // 2), "only 'same' zero padding supported"
    assert Cin_w == Cin
    # TODO(synk): padding_mode='circular', stride>1, dilation>1, groups>1 not implemented.

    # --- Conv2dMasked.forward_pre: apply the pruning masks (one HBM-side pass) ---
    w = weight_oihw * weight_mask
    if bias is None:
        b = jnp.zeros((Cout,), jnp.float32)
    elif bias_mask is not None:
        b = (bias * bias_mask).astype(jnp.float32)
    else:
        b = bias.astype(jnp.float32)

    ph, pw = KH // 2, KW // 2
    cdt = jnp.dtype(compute_dtype)
    # TODO(synk): keep activations NHWC / channel-padded across the whole network to
    # avoid the per-layer NCHW<->NHWC HBM passes done here (module contract is NCHW).
    x_nhwc = jnp.transpose(x_nchw, (0, 2, 3, 1)).astype(cdt)   # (N, H, W, Cin)
    w_hwio = jnp.transpose(w, (2, 3, 1, 0))                    # (KH, KW, Cin, Cout)

    Cout_p = _round_up(Cout, LANE)
    TCO = 256 if Cout_p % 256 == 0 else LANE     # MXU-native N tile (128 also suits v5e)
    n_co = Cout_p // TCO

    fold_kw = KW * Cin <= LANE                   # stem convs: fold kw into the K dim
    Wo_p = _round_up(W, SUBLANE)                 # output columns, sublane aligned
    if fold_kw:
        Kc = LANE                                # = round_up(KW*Cin, LANE)
        KWk = 1
        Wx = Wo_p
    else:
        Kc = _round_up(Cin, LANE)
        KWk = KW
        Wx = _round_up(W + 2 * pw, SUBLANE)      # full halo width, sublane aligned

    TH, n_rows = _pick_row_tile(H, Wx, TCO)
    Ho_p = TH * n_rows
    Hp = Ho_p + KH - 1                           # input rows needed incl. halo

    if fold_kw:
        # x_fold[n, u, w, kw*Cin + c] = x_halo[n, u, w + kw, c]
        x_halo = jnp.pad(x_nhwc, ((0, 0), (ph, Hp - H - ph), (pw, pw), (0, 0)))
        x_fold = jnp.concatenate(
            [x_halo[:, :, kw:kw + W, :] for kw in range(KW)], axis=-1)
        x_in = jnp.pad(x_fold,
                       ((0, 0), (0, 0), (0, Wo_p - W), (0, Kc - KW * Cin)))
        # w_fold[kh, 0, kw*Cin + c, o] = w_hwio[kh, kw, c, o]
        w_in = jnp.pad(w_hwio.reshape(KH, KW * Cin, Cout),
                       ((0, 0), (0, Kc - KW * Cin), (0, Cout_p - Cout))
                       ).astype(cdt).reshape(KH, 1, Kc, Cout_p)
    else:
        x_in = jnp.pad(x_nhwc, ((0, 0), (ph, Hp - H - ph),
                                (pw, Wx - W - pw), (0, Kc - Cin)))
        w_in = jnp.pad(w_hwio, ((0, 0), (0, 0), (0, Kc - Cin),
                                (0, Cout_p - Cout))).astype(cdt)

    b_in = jnp.pad(b, (0, Cout_p - Cout)).reshape(1, Cout_p)

    grid = (N, n_co, n_rows)
    out_dtype = x_nchw.dtype
    out_isz = jnp.dtype(out_dtype).itemsize

    # --- VMEM budget from the actual (double-buffered) block footprints ---
    block_bytes = (2 * Hp * Wx * Kc * cdt.itemsize          # resident image
                   + 2 * KH * KWk * Kc * TCO * cdt.itemsize  # weight tile
                   + 2 * TCO * 4                             # bias tile
                   + 2 * TH * Wo_p * TCO * out_isz           # output tile
                   + TH * Wx * TCO * 4)                      # f32 accumulator (regs/spill)
    try:
        vmem_cap = int(pltpu.get_tpu_info().vmem_capacity_bytes)
    except Exception:
        vmem_cap = 64 * 1024 * 1024
    vmem_limit = max(block_bytes + (4 << 20), 32 << 20)
    vmem_limit = min(vmem_limit, vmem_cap * 3 // 4)          # ~96 MiB v5e/v6e, <64 MiB v7x

    flops = 2 * N * n_co * n_rows * KH * KWk * (TH * Wx) * Kc * TCO
    bytes_accessed = (x_in.size * cdt.itemsize + N * w_in.size * cdt.itemsize
                      + b_in.size * 4 + N * Ho_p * Wo_p * Cout_p * out_isz)

    out_p = pl.pallas_call(
        _masked_conv_kernel,
        out_shape=jax.ShapeDtypeStruct((N, Ho_p, Wo_p, Cout_p), out_dtype),
        grid_spec=pltpu.PrefetchScalarGridSpec(
            num_scalar_prefetch=0,
            grid=grid,
            in_specs=[
                # Full padded image: block index depends only on n, so it is DMA'd
                # once per image and stays resident across the (co, row) axes.
                pl.BlockSpec((1, Hp, Wx, Kc), lambda n, co, j: (n, 0, 0, 0)),
                pl.BlockSpec((KH, KWk, Kc, TCO), lambda n, co, j: (0, 0, 0, co)),
                pl.BlockSpec((1, TCO), lambda n, co, j: (0, co)),
            ],
            out_specs=pl.BlockSpec((1, TH, Wo_p, TCO),
                                   lambda n, co, j: (n, j, 0, co)),
        ),
        compiler_params=pltpu.CompilerParams(
            dimension_semantics=("parallel", "parallel", "parallel"),
            vmem_limit_bytes=int(vmem_limit),
        ),
        cost_estimate=pl.CostEstimate(flops=int(flops), transcendentals=0,
                                      bytes_accessed=int(bytes_accessed)),
    )(x_in, w_in, b_in)

    out = out_p[:, :H, :W, :Cout]                 # drop row/col/lane padding
    return jnp.transpose(out, (0, 3, 1, 2))       # -> NCHW


def conv2d_masked_reference(x_nchw, weight_oihw, bias, weight_mask, bias_mask=None):
    """Pure-JAX reference (lax.conv, f32 HIGHEST) for correctness checks."""
    w = weight_oihw * weight_mask
    b = bias
    if bias is not None and bias_mask is not None:
        b = bias * bias_mask
    KH, KW = w.shape[2], w.shape[3]
    out = jax.lax.conv_general_dilated(
        x_nchw, w, window_strides=(1, 1),
        padding=((KH // 2, KH // 2), (KW // 2, KW // 2)),
        dimension_numbers=("NCHW", "OIHW", "NCHW"),
        precision=jax.lax.Precision.HIGHEST)
    if b is not None:
        out = out + b.reshape(1, -1, 1, 1)
    return out


if __name__ == "__main__":
    key = jax.random.PRNGKey(0)
    fwd = jax.jit(conv2d_masked,
                  static_argnames=("stride", "padding", "dilation", "groups",
                                   "compute_dtype"))

    configs = [
        # (name,                              N, Cin, H,  W,  Cout, K, with_bias, with_bias_mask)
        ("stem 3x3, kw-folded path",          2, 4,   16, 16, 8,    3, True,  True),
        ("wide 3x3, roll path, no bias",      1, 48,  13, 16, 8,    3, False, False),
        ("stem 5x5, kw-folded path, no mask", 1, 4,   9,  9,  16,   5, True,  False),
    ]

    for idx, (name, N, Cin, H, W, Cout, K, with_bias, with_bias_mask) in enumerate(configs):
        kx, kw_, kb, kwm, kbm = jax.random.split(jax.random.fold_in(key, idx), 5)
        x = jax.random.normal(kx, (N, Cin, H, W), jnp.float32)
        weight = 0.1 * jax.random.normal(kw_, (Cout, Cin, K, K), jnp.float32)
        weight_mask = (jax.random.uniform(kwm, weight.shape) > 0.5).astype(jnp.float32)
        bias = 0.1 * jax.random.normal(kb, (Cout,), jnp.float32) if with_bias else None
        bias_mask = ((jax.random.uniform(kbm, (Cout,)) > 0.5).astype(jnp.float32)
                     if (with_bias and with_bias_mask) else None)

        out = jax.block_until_ready(
            fwd(x, weight, bias, weight_mask, bias_mask, padding=K // 2))
        ref = jax.block_until_ready(
            conv2d_masked_reference(x, weight, bias, weight_mask, bias_mask))

        np.testing.assert_allclose(np.asarray(out), np.asarray(ref),
                                   rtol=2e-2, atol=2e-2,
                                   err_msg=f"mismatch for config: {name}")
        assert out.shape == (N, Cout, H, W), name

    print("KERNEL_OK")
</pallas_src>

<mosaic_0001>
module attributes {stable_mosaic.version = 11 : i64} {
  func.func @_masked_conv_kernel(%arg0: i32, %arg1: i32, %arg2: i32, %arg3: memref<1x18x16x128xbf16, #tpu.memory_space<vmem>>, %arg4: memref<3x1x128x128xbf16, #tpu.memory_space<vmem>>, %arg5: memref<1x128xf32, #tpu.memory_space<vmem>>, %arg6: memref<1x16x16x128xf32, #tpu.memory_space<vmem>>) attributes {dimension_semantics = [#tpu.dimension_semantics<parallel>, #tpu.dimension_semantics<parallel>, #tpu.dimension_semantics<parallel>], iteration_bounds = array<i64: 2, 1, 1>, scalar_prefetch = 0 : i64, scratch_operands = 0 : i64, tpu.core_type = #tpu.core_type<tc>, window_params = [{transform_indices = @transform_0, window_bounds = array<i64: 1, 18, 16, 128>}, {transform_indices = @transform_1, window_bounds = array<i64: 3, 1, 128, 128>}, {transform_indices = @transform_2, window_bounds = array<i64: 1, 128>}, {transform_indices = @transform_3, window_bounds = array<i64: 1, 16, 16, 128>}]} {
    %c16_i32 = arith.constant 16 : i32
    %0 = arith.muli %arg2, %c16_i32 : i32
    %c0_i32 = arith.constant 0 : i32
    %1 = arith.addi %0, %c0_i32 : i32
    %c0 = arith.constant 0 : index
    %2 = arith.index_cast %1 : i32 to index
    %c0_0 = arith.constant 0 : index
    %c0_1 = arith.constant 0 : index
    %3 = vector.load %arg3[%c0, %2, %c0_0, %c0_1] : memref<1x18x16x128xbf16, #tpu.memory_space<vmem>>, vector<1x16x16x128xbf16>
    %4 = vector.shape_cast %3 : vector<1x16x16x128xbf16> to vector<256x128xbf16>
    %c0_2 = arith.constant 0 : index
    %c0_3 = arith.constant 0 : index
    %c0_4 = arith.constant 0 : index
    %c0_5 = arith.constant 0 : index
    %5 = vector.load %arg4[%c0_2, %c0_3, %c0_4, %c0_5] : memref<3x1x128x128xbf16, #tpu.memory_space<vmem>>, vector<1x1x128x128xbf16>
    %6 = vector.shape_cast %5 : vector<1x1x128x128xbf16> to vector<128x128xbf16>
    %cst = arith.constant dense<0.000000e+00> : vector<256x128xf32>
    %7 = tpu.matmul %4, %6, %cst {dimension_numbers = #tpu.dot_dimension_numbers<[1], [0], [0], [1], [0, 0, 1, 1], [], []>} : vector<256x128xbf16>, vector<128x128xbf16>, vector<256x128xf32> -> vector<256x128xf32>
    %c0_6 = arith.constant 0 : index
    %c0_7 = arith.constant 0 : index
    %8 = vector.load %arg5[%c0_6, %c0_7] : memref<1x128xf32, #tpu.memory_space<vmem>>, vector<1x128xf32>
    %9 = vector.broadcast %8 : vector<1x128xf32> to vector<256x128xf32>
    %10 = arith.addf %7, %9 : vector<256x128xf32>
    %c1_i32 = arith.constant 1 : i32
    %11 = arith.addi %0, %c1_i32 : i32
    %c0_8 = arith.constant 0 : index
    %12 = arith.index_cast %11 : i32 to index
    %c0_9 = arith.constant 0 : index
    %c0_10 = arith.constant 0 : index
    %13 = vector.load %arg3[%c0_8, %12, %c0_9, %c0_10] : memref<1x18x16x128xbf16, #tpu.memory_space<vmem>>, vector<1x16x16x128xbf16>
    %14 = vector.shape_cast %13 : vector<1x16x16x128xbf16> to vector<256x128xbf16>
    %c1 = arith.constant 1 : index
    %c0_11 = arith.constant 0 : index
    %c0_12 = arith.constant 0 : index
    %c0_13 = arith.constant 0 : index
    %15 = vector.load %arg4[%c1, %c0_11, %c0_12, %c0_13] : memref<3x1x128x128xbf16, #tpu.memory_space<vmem>>, vector<1x1x128x128xbf16>
    %16 = vector.shape_cast %15 : vector<1x1x128x128xbf16> to vector<128x128xbf16>
    %cst_14 = arith.constant dense<0.000000e+00> : vector<256x128xf32>
    %17 = tpu.matmul %14, %16, %cst_14 {dimension_numbers = #tpu.dot_dimension_numbers<[1], [0], [0], [1], [0, 0, 1, 1], [], []>} : vector<256x128xbf16>, vector<128x128xbf16>, vector<256x128xf32> -> vector<256x128xf32>
    %18 = arith.addf %10, %17 : vector<256x128xf32>
    %c2_i32 = arith.constant 2 : i32
    %19 = arith.addi %0, %c2_i32 : i32
    %c0_15 = arith.constant 0 : index
    %20 = arith.index_cast %19 : i32 to index
    %c0_16 = arith.constant 0 : index
    %c0_17 = arith.constant 0 : index
    %21 = vector.load %arg3[%c0_15, %20, %c0_16, %c0_17] : memref<1x18x16x128xbf16, #tpu.memory_space<vmem>>, vector<1x16x16x128xbf16>
    %22 = vector.shape_cast %21 : vector<1x16x16x128xbf16> to vector<256x128xbf16>
    %c2 = arith.constant 2 : index
    %c0_18 = arith.constant 0 : index
    %c0_19 = arith.constant 0 : index
    %c0_20 = arith.constant 0 : index
    %23 = vector.load %arg4[%c2, %c0_18, %c0_19, %c0_20] : memref<3x1x128x128xbf16, #tpu.memory_space<vmem>>, vector<1x1x128x128xbf16>
    %24 = vector.shape_cast %23 : vector<1x1x128x128xbf16> to vector<128x128xbf16>
    %cst_21 = arith.constant dense<0.000000e+00> : vector<256x128xf32>
    %25 = tpu.matmul %22, %24, %cst_21 {dimension_numbers = #tpu.dot_dimension_numbers<[1], [0], [0], [1], [0, 0, 1, 1], [], []>} : vector<256x128xbf16>, vector<128x128xbf16>, vector<256x128xf32> -> vector<256x128xf32>
    %26 = arith.addf %18, %25 : vector<256x128xf32>
    %27 = vector.shape_cast %26 : vector<256x128xf32> to vector<16x16x128xf32>
    %28 = vector.shape_cast %27 : vector<16x16x128xf32> to vector<1x16x16x128xf32>
    %c0_22 = arith.constant 0 : index
    %c0_23 = arith.constant 0 : index
    %c0_24 = arith.constant 0 : index
    %c0_25 = arith.constant 0 : index
    %29 = vector.load %arg6[%c0_22, %c0_23, %c0_24, %c0_25] : memref<1x16x16x128xf32, #tpu.memory_space<vmem>>, vector<1x16x16x128xf32>
    tpu.vector_store %arg6[%c0_22, %c0_23, %c0_24, %c0_25], %28 {strides = array<i32>} : memref<1x16x16x128xf32, #tpu.memory_space<vmem>>, vector<1x16x16x128xf32>,
    return
  }
  func.func @transform_0(%arg0: i32, %arg1: i32, %arg2: i32) -> (i32, i32, i32, i32) {
    %c0_i32 = arith.constant 0 : i32
    %c0_i32_0 = arith.constant 0 : i32
    %c0_i32_1 = arith.constant 0 : i32
    %c0_i32_2 = arith.constant 0 : i32
    return %arg0, %c0_i32, %c0_i32_0, %c0_i32_1 : i32, i32, i32, i32
  }
  func.func @transform_1(%arg0: i32, %arg1: i32, %arg2: i32) -> (i32, i32, i32, i32) {
    %c0_i32 = arith.constant 0 : i32
    %c0_i32_0 = arith.constant 0 : i32
    %c0_i32_1 = arith.constant 0 : i32
    %c0_i32_2 = arith.constant 0 : i32
    return %c0_i32, %c0_i32_0, %c0_i32_1, %arg1 : i32, i32, i32, i32
  }
  func.func @transform_2(%arg0: i32, %arg1: i32, %arg2: i32) -> (i32, i32) {
    %c0_i32 = arith.constant 0 : i32
    %c0_i32_0 = arith.constant 0 : i32
    return %c0_i32, %arg1 : i32, i32
  }
  func.func @transform_3(%arg0: i32, %arg1: i32, %arg2: i32) -> (i32, i32, i32, i32) {
    %c0_i32 = arith.constant 0 : i32
    %c0_i32_0 = arith.constant 0 : i32
    return %arg0, %arg2, %c0_i32, %arg1 : i32, i32, i32, i32
  }
}

</mosaic_0001>

<bundles_post_ra>
// kernel: mul.3
= control target key start
LH: loop header
LB: loop body
LE: loop exit
PB: predicated region body
PF: predicated region fallthrough
CT: control target
= control target key end

     0   :  { %s34_s0 = inlined_call_operand.vmem [shape: f32[8], index: 0, kind: input, shape index: {}]   ;;  %s35_s1 = inlined_call_operand.vmem [shape: f32[8], index: 1, kind: input, shape index: {}]   ;;  %s36_s2 = inlined_call_operand.vmem [shape: f32[8], index: 2, kind: output, shape index: {}]  }
   0x1   :  { %v3_v0 = vld [vmem:[%s34_s0] sm:$0x1] }
   0x2   :  { %v4_v1 = vld [vmem:[%s35_s1] sm:$0x1] }
   0x3   :  { %v7_v2 = vmul.f32 %v4_v1, %v3_v0 }
   0x5   :  { %9 = vst [vmem:[%s36_s2] sm:$0x1] %v7_v2 }

// kernel: conv2d_masked.1
= control target key start
LH: loop header
LB: loop body
LE: loop exit
PB: predicated region body
PF: predicated region fallthrough
CT: control target
= control target key end

     0   :  { %s1899_s12 = smov 0   ;;  %s1901_s13 = smov 0   ;;  %s2205_s0 = inlined_call_operand.vmem [shape: bf16[2,18,16,128], index: 0, kind: input, shape index: {}]   ;;  %s2206_s1 = inlined_call_operand.vmem [shape: bf16[3,1,128,128], index: 1, kind: input, shape index: {}]   ;;  %s2207_s2 = inlined_call_operand.vmem [shape: f32[1,128], index: 2, kind: input, shape index: {}]   ;;  %s2208_s3 = inlined_call_operand.vmem [shape: f32[2,16,16,128], index: 3, kind: output, shape index: {}]  }
   0x1   :  { %s1903_s14 = smov 0  }
   0x2 LB: > { %s32_s15 = sadd.s32 1, %s1873_s13  ;;  %p1342_p0 = scmp.ge.s32.totalorder %s1877_s14, 1  ;;  %s1877_s14 = sphi %s1903_s14, %s13_s14   ;;  %s1873_s13 = sphi %s1901_s13, %s2210_s13   ;;  %s1869_s12 = sphi %s1899_s12, %s2209_s12  }
   0x3   : > { %p34_p1 = scmp.ge.s32.totalorder %s32_s15, 2  ;;  %p177_p2 = scmp.lt.s32.totalorder %s1877_s14, 3 }
   0x5   : > { %s2212_s15 = smov (%p34_p1, %s32_s15), 0  ;;  %p178_p3 = pnand %p1342_p0, %p177_p2 }
   0x6   : > { %p216_p4 = scmp.lt.s32.totalorder (!%p178_p3), %s1869_s12, 1 }
   0x7   : > { %181 = sbr.rel (%p178_p3) target bundleno = 365 (0x16d), region = 32 }
   0xc   : > { %v1756_v0 = vld [vmem:[%s2206_s1 + $0x38] sm:$0xff]  ;;  %v1755_v3 = vld [vmem:[%s2206_s1 + $0x30] sm:$0xff]  ;;  %v1754_v6 = vld [vmem:[%s2206_s1 + $0x28] sm:$0xff]  ;;  %s2214_s12 = smov (!%p216_p4, %s1869_s12), 1 }
   0xd   : > { %v1780_v1 = vld [vmem:[%s2206_s1 + $0x78] sm:$0xff]  ;;  %442 = vmatpush.bf16.msra.mxu0 %v1756_v0  ;;  %1805 = vmatpush.bf16.msra.mxu3 %v1756_v0  ;;  %v1779_v4 = vld [vmem:[%s2206_s1 + $0x70] sm:$0xff]  ;;  %v1778_v7 = vld [vmem:[%s2206_s1 + $0x68] sm:$0xff]  ;;  %s1829_s4 = smul.u32 144, %s2214_s12  ;;  %s1732_s24 = sshll.u32 %s2214_s12, 8 }
   0xe   : > { %v1928_v2 = vld [vmem:[%s2206_s1 + $0xb8] sm:$0xff]  ;;  %728 = vmatpush.bf16.msra.mxu1 %v1780_v1  ;;  %v1940_v5 = vld [vmem:[%s2206_s1 + $0xb0] sm:$0xff]  ;;  %v1952_v8 = vld [vmem:[%s2206_s1 + $0xa8] sm:$0xff]  ;;  %s2073_s27 = scalar_lea.vmem %s2208_s3, %s1732_s24 }
   0xf   : > { %1046 = vmatpush.bf16.msra.mxu2 %v1928_v2  ;;  %v1753_v9 = vld [vmem:[%s2206_s1 + $0x20] sm:$0xff]  ;;  %v1752_v12 = vld [vmem:[%s2206_s1 + $0x18] sm:$0xff]  ;;  %v1751_v15 = vld [vmem:[%s2206_s1 + $0x10] sm:$0xff]  ;;  %s2011_s17 = scalar_lea.vmem %s2205_s0, %s1829_s4 }
  0x10   : > { %v1777_v10 = vld [vmem:[%s2206_s1 + $0x60] sm:$0xff]  ;;  %v1776_v13 = vld [vmem:[%s2206_s1 + $0x58] sm:$0xff]  ;;  %v1775_v16 = vld [vmem:[%s2206_s1 + $0x50] sm:$0xff] }
  0x11   : > { %443 = vmatpush.bf16.msra.mxu0 %v1755_v3  ;;  %1806 = vmatpush.bf16.msra.mxu3 %v1755_v3  ;;  %v1964_v11 = vld [vmem:[%s2206_s1 + $0xa0] sm:$0xff]  ;;  %v1977_v14 = vld [vmem:[%s2206_s1 + $0x98] sm:$0xff]  ;;  %v1992_v17 = vld [vmem:[%s2206_s1 + $0x90] sm:$0xff] }
  0x12   : > { %729 = vmatpush.bf16.msra.mxu1 %v1779_v4  ;;  %v1750_v18 = vld [vmem:[%s2206_s1 + $0x8] sm:$0xff]  ;;  %v1749_v21 = vld [vmem:[%s2206_s1] sm:$0xff]  ;;  %v1781_v27 = vld [vmem:[%s2011_s17 + $0x10] sm:$0xff] }
  0x13   : > { %1047 = vmatpush.bf16.msra.mxu2 %v1940_v5  ;;  %v1774_v19 = vld [vmem:[%s2206_s1 + $0x48] sm:$0xff]  ;;  %v1773_v22 = vld [vmem:[%s2206_s1 + $0x40] sm:$0xff]  ;;  %v1758_v30 = vld [vmem:[%s2011_s17 + $0x10] sm:$0xff] }
  0x14   : > { %v1798_v20 = vld [vmem:[%s2206_s1 + $0x88] sm:$0xff]  ;;  %v1797_v23 = vld [vmem:[%s2206_s1 + $0x80] sm:$0xff]  ;;  %v1782_v31 = vld [vmem:[%s2011_s17 + $0x18] sm:$0xff] }
  0x15   : > { %444 = vmatpush.bf16.msra.mxu0 %v1754_v6  ;;  %1807 = vmatpush.bf16.msra.mxu3 %v1754_v6  ;;  %v1733_v24 = vld [vmem:[%s2011_s17] sm:$0xff]  ;;  %v1757_v26 = vld [vmem:[%s2011_s17 + $0x8] sm:$0xff]  ;;  %v1735_v32 = vld [vmem:[%s2011_s17 + $0x10] sm:$0xff] }
  0x16   : > { %730 = vmatpush.bf16.msra.mxu1 %v1778_v7  ;;  %v1745_v25 = vld [vmem:[%s2011_s17 + $0x60] sm:$0xff]  ;;  %v1734_v28 = vld [vmem:[%s2011_s17 + $0x8] sm:$0xff]  ;;  %v1747_v33 = vld [vmem:[%s2011_s17 + $0x70] sm:$0xff] }
  0x17   : > { %1048 = vmatpush.bf16.msra.mxu2 %v1952_v8  ;;  %v1746_v29 = vld [vmem:[%s2011_s17 + $0x68] sm:$0xff]  ;;  %v1759_v34 = vld [vmem:[%s2011_s17 + $0x18] sm:$0xff]  ;;  %v1783_v35 = vld [vmem:[%s2011_s17 + $0x20] sm:$0xff] }
  0x18   : > { %v1736_v36 = vld [vmem:[%s2011_s17 + $0x18] sm:$0xff]  ;;  %v1760_v38 = vld [vmem:[%s2011_s17 + $0x20] sm:$0xff]  ;;  %v1784_v39 = vld [vmem:[%s2011_s17 + $0x28] sm:$0xff] }
  0x19   : > { %445 = vmatpush.bf16.msra.mxu0 %v1753_v9  ;;  %1808 = vmatpush.bf16.msra.mxu3 %v1753_v9  ;;  %v1748_v37 = vld [vmem:[%s2011_s17 + $0x78] sm:$0xff]  ;;  %v1737_v40 = vld [vmem:[%s2011_s17 + $0x20] sm:$0xff]  ;;  %v1769_v41 = vld [vmem:[%s2011_s17 + $0x68] sm:$0xff] }
  0x1a   : > { %731 = vmatpush.bf16.msra.mxu1 %v1777_v10  ;;  %v1761_v42 = vld [vmem:[%s2011_s17 + $0x28] sm:$0xff]  ;;  %v1785_v43 = vld [vmem:[%s2011_s17 + $0x30] sm:$0xff]  ;;  %v1786_v47 = vld [vmem:[%s2011_s17 + $0x38] sm:$0xff] }
  0x1b   : > { %1049 = vmatpush.bf16.msra.mxu2 %v1964_v11  ;;  %v1738_v44 = vld [vmem:[%s2011_s17 + $0x28] sm:$0xff]  ;;  %v1770_v45 = vld [vmem:[%s2011_s17 + $0x70] sm:$0xff]  ;;  %v1771_v49 = vld [vmem:[%s2011_s17 + $0x78] sm:$0xff] }
  0x1c   : > { %v1762_v46 = vld [vmem:[%s2011_s17 + $0x30] sm:$0xff]  ;;  %v1763_v50 = vld [vmem:[%s2011_s17 + $0x38] sm:$0xff]  ;;  %v1787_v51 = vld [vmem:[%s2011_s17 + $0x40] sm:$0xff] }
  0x1d   : > { %446 = vmatpush.bf16.msra.mxu0 %v1752_v12  ;;  %1809 = vmatpush.bf16.msra.mxu3 %v1752_v12  ;;  %v1739_v48 = vld [vmem:[%s2011_s17 + $0x30] sm:$0xff]  ;;  %v1740_v52 = vld [vmem:[%s2011_s17 + $0x38] sm:$0xff]  ;;  %v1772_v53 = vld [vmem:[%s2011_s17 + $0x80] sm:$0xff] }
  0x1e   : > { %732 = vmatpush.bf16.msra.mxu1 %v1776_v13  ;;  %v1764_v54 = vld [vmem:[%s2011_s17 + $0x40] sm:$0xff]  ;;  %v1788_v55 = vld [vmem:[%s2011_s17 + $0x48] sm:$0xff]  ;;  %v1793_v58 = vld [vmem:[%s2011_s17 + $0x70] sm:$0xff] }
  0x1f   : > { %1050 = vmatpush.bf16.msra.mxu2 %v1977_v14  ;;  %v2060_v56 = vld [vmem:[%s2207_s2] ss:$0 sm:$0xff]  ;;  %v1765_v60 = vld [vmem:[%s2011_s17 + $0x48] sm:$0xff]  ;;  %v1789_v61 = vld [vmem:[%s2011_s17 + $0x50] sm:$0xff] }
  0x20   : > { %v1741_v57 = vld [vmem:[%s2011_s17 + $0x40] sm:$0xff] }
  0x21   : > { %447 = vmatpush.bf16.msra.mxu0 %v1751_v15  ;;  %1810 = vmatpush.bf16.msra.mxu3 %v1751_v15  ;;  %v1790_v15 = vld [vmem:[%s2011_s17 + $0x58] sm:$0xff] }
  0x22   : > { %733 = vmatpush.bf16.msra.mxu1 %v1775_v16 }
  0x23   : > { %1051 = vmatpush.bf16.msra.mxu2 %v1992_v17 }
  0x25   : > { %448 = vmatpush.bf16.msra.mxu0 %v1750_v18  ;;  %1811 = vmatpush.bf16.msra.mxu3 %v1750_v18 }
  0x26   : > { %734 = vmatpush.bf16.msra.mxu1 %v1774_v19 }
  0x27   : > { %1052 = vmatpush.bf16.msra.mxu2 %v1798_v20 }
  0x29   : > { %449 = vmatpush.bf16.msra.mxu0 %v1749_v21  ;;  %1812 = vmatpush.bf16.msra.mxu3 %v1749_v21 }
  0x2a   : > { %735 = vmatpush.bf16.msra.mxu1 %v1773_v22 }
  0x2b   : > { %1053 = vmatpush.bf16.msra.mxu2 %v1797_v23 }
  0x2c   : > { %450 = vmatmul.bf16.vlgmr.msra.gmra.mxu0 %v1733_v24  ;;  %510 = vmatmul.bf16.vlgmr.msra.gmra.mxu3 %v1745_v25 }
  0x2d   : > { %1813 = vmatpush.bf16.msrb.mxu3 %v1780_v1  ;;  %736 = vmatmul.bf16.vlgmr.msra.gmra.mxu1 %v1757_v26 }
  0x2e   : > { %1054 = vmatmul.bf16.vlgmr.msra.gmra.mxu2 %v1781_v27 }
  0x31   : > { %1814 = vmatpush.bf16.msrb.mxu3 %v1779_v4 }
  0x35   : > { %1815 = vmatpush.bf16.msrb.mxu3 %v1778_v7 }
  0x39   : > { %1816 = vmatpush.bf16.msrb.mxu3 %v1777_v10  ;;  %v1742_v10 = vld [vmem:[%s2011_s17 + $0x48] sm:$0xff] }
  0x3c   : > { %455 = vmatmul.bf16.gmra.mxu0 %v1734_v28  ;;  %515 = vmatmul.bf16.gmra.mxu3 %v1746_v29  ;;  %v1743_v28 = vld [vmem:[%s2011_s17 + $0x50] sm:$0xff]  ;;  %v1795_v29 = vld [vmem:[%s2011_s17 + $0x80] sm:$0xff] }
  0x3d   : > { %1817 = vmatpush.bf16.msrb.mxu3 %v1776_v13  ;;  %741 = vmatmul.bf16.gmra.mxu1 %v1758_v30 }
  0x3e   : > { %1059 = vmatmul.bf16.gmra.mxu2 %v1782_v31 }
  0x41   : > { %1818 = vmatpush.bf16.msrb.mxu3 %v1775_v16 }
  0x45   : > { %1819 = vmatpush.bf16.msrb.mxu3 %v1774_v19 }
  0x49   : > { %1820 = vmatpush.bf16.msrb.mxu3 %v1773_v22 }
  0x4c   : > { %460 = vmatmul.bf16.gmra.mxu0 %v1735_v32  ;;  %520 = vmatmul.bf16.gmra.mxu3 %v1747_v33  ;;  %v1767_v32 = vld [vmem:[%s2011_s17 + $0x58] sm:$0xff]  ;;  %v1791_v33 = vld [vmem:[%s2011_s17 + $0x60] sm:$0xff] }
  0x4d   : > { %1821 = vmatpush.bf16.msra.mxu3 %v1928_v2  ;;  %746 = vmatmul.bf16.gmra.mxu1 %v1759_v34 }
  0x4e   : > { %1064 = vmatmul.bf16.gmra.mxu2 %v1783_v35 }
  0x51   : > { %1822 = vmatpush.bf16.msra.mxu3 %v1940_v5 }
  0x55   : > { %1823 = vmatpush.bf16.msra.mxu3 %v1952_v8 }
  0x59   : > { %1824 = vmatpush.bf16.msra.mxu3 %v1964_v11  ;;  %v1794_v11 = vld [vmem:[%s2011_s17 + $0x78] sm:$0xff] }
  0x5c   : > { %465 = vmatmul.bf16.gmra.mxu0 %v1736_v36  ;;  %525 = vmatmul.bf16.gmra.mxu3 %v1748_v37 }
  0x5d   : > { %1825 = vmatpush.bf16.msra.mxu3 %v1977_v14  ;;  %751 = vmatmul.bf16.gmra.mxu1 %v1760_v38  ;;  %v1766_v14 = vld [vmem:[%s2011_s17 + $0x50] sm:$0xff] }
  0x5e   : > { %1069 = vmatmul.bf16.gmra.mxu2 %v1784_v39 }
  0x61   : > { %1826 = vmatpush.bf16.msra.mxu3 %v1992_v17 }
  0x65   : > { %1827 = vmatpush.bf16.msra.mxu3 %v1798_v20 }
  0x69   : > { %1828 = vmatpush.bf16.msra.mxu3 %v1797_v23 }
  0x6c   : > { %470 = vmatmul.bf16.gmra.mxu0 %v1737_v40  ;;  %796 = vmatmul.bf16.vlgmr.msrb.gmra.mxu3 %v1769_v41 }
  0x6d   : > { %756 = vmatmul.bf16.gmra.mxu1 %v1761_v42 }
  0x6e   : > { %1074 = vmatmul.bf16.gmra.mxu2 %v1785_v43 }
  0x7c   : > { %475 = vmatmul.bf16.gmra.mxu0 %v1738_v44  ;;  %801 = vmatmul.bf16.gmra.mxu3 %v1770_v45 }
  0x7d   : > { %761 = vmatmul.bf16.gmra.mxu1 %v1762_v46  ;;  %v1744_v46 = vld [vmem:[%s2011_s17 + $0x58] sm:$0xff] }
  0x7e   : > { %1079 = vmatmul.bf16.gmra.mxu2 %v1786_v47  ;;  %v1796_v47 = vld [vmem:[%s2011_s17 + $0x88] sm:$0xff] }
  0x8c   : > { %480 = vmatmul.bf16.gmra.mxu0 %v1739_v48  ;;  %806 = vmatmul.bf16.gmra.mxu3 %v1771_v49 }
  0x8d   : > { %766 = vmatmul.bf16.gmra.mxu1 %v1763_v50  ;;  %v1768_v50 = vld [vmem:[%s2011_s17 + $0x60] sm:$0xff] }
  0x8e   : > { %1084 = vmatmul.bf16.gmra.mxu2 %v1787_v51  ;;  %v1792_v51 = vld [vmem:[%s2011_s17 + $0x68] sm:$0xff] }
  0x9c   : > { %485 = vmatmul.bf16.gmra.mxu0 %v1740_v52  ;;  %811 = vmatmul.bf16.gmra.mxu3 %v1772_v53 }
  0x9d   : > { %771 = vmatmul.bf16.gmra.mxu1 %v1764_v54 }
  0x9e   : > { %1089 = vmatmul.bf16.gmra.mxu2 %v1788_v55 }
  0xa9   : > { %v451_v59 = vpop.f32.mrf.mxu0 }
  0xaa   : > { %v452_v62 = vadd.f32 %v2060_v56, %v451_v59  ;;  %v737_v63 = vpop.f32.mrf.mxu1 }
  0xac   : > { %490 = vmatmul.bf16.gmra.mxu0 %v1741_v57  ;;  %1114 = vmatmul.bf16.vlgmr.msra.gmra.mxu3 %v1793_v58  ;;  %v817_v0 = vadd.f32 %v737_v63, %v452_v62 }
  0xad   : > { %776 = vmatmul.bf16.gmra.mxu1 %v1765_v60 }
  0xae   : > { %1094 = vmatmul.bf16.gmra.mxu2 %v1789_v61 }
  0xaf   : > { %v2068_v1 = vpop.f32.mrf.mxu3 }
  0xb1   : > { %v1055_v2 = vpop.f32.mrf.mxu2  ;;  %v453_v4 = vpop.f32.mrf.mxu0 }
  0xb2   : > { %v1135_v3 = vadd.f32 %v1055_v2, %v817_v0  ;;  %v739_v5 = vpop.f32.mrf.mxu1  ;;  %v454_v6 = vadd.f32 %v2060_v56, %v453_v4 }
  0xb4   : > { %1167 = vst [vmem:[%s2073_s27] sm:$0xff] %v1135_v3  ;;  %v818_v7 = vadd.f32 %v739_v5, %v454_v6 }
  0xb7   : > { %v2077_v8 = vpop.f32.mrf.mxu3 }
  0xb9   : > { %v1057_v9 = vpop.f32.mrf.mxu2  ;;  %v456_v13 = vpop.f32.mrf.mxu0 }
  0xba   : > { %v1136_v12 = vadd.f32 %v1057_v9, %v818_v7  ;;  %v457_v16 = vadd.f32 %v2060_v56, %v456_v13  ;;  %v742_v17 = vpop.f32.mrf.mxu1 }
  0xbc   : > { %1168 = vst [vmem:[%s2073_s27 + $0x8] sm:$0xff] %v1136_v12  ;;  %495 = vmatmul.bf16.gmra.mxu0 %v1742_v10  ;;  %1119 = vmatmul.bf16.gmra.mxu3 %v1794_v11  ;;  %v819_v18 = vadd.f32 %v742_v17, %v457_v16 }
  0xbd   : > { %781 = vmatmul.bf16.gmra.mxu1 %v1766_v14 }
  0xbe   : > { %1099 = vmatmul.bf16.gmra.mxu2 %v1790_v15 }
  0xbf   : > { %v2085_v19 = vpop.f32.mrf.mxu3 }
  0xc1   : > { %v1060_v20 = vpop.f32.mrf.mxu2  ;;  %v458_v22 = vpop.f32.mrf.mxu0 }
  0xc2   : > { %v1137_v21 = vadd.f32 %v1060_v20, %v819_v18  ;;  %v744_v23 = vpop.f32.mrf.mxu1  ;;  %v459_v24 = vadd.f32 %v2060_v56, %v458_v22 }
  0xc4   : > { %1169 = vst [vmem:[%s2073_s27 + $0x10] sm:$0xff] %v1137_v21  ;;  %v820_v25 = vadd.f32 %v744_v23, %v459_v24 }
  0xc7   : > { %v2089_v26 = vpop.f32.mrf.mxu3 }
  0xc9   : > { %v1062_v27 = vpop.f32.mrf.mxu2  ;;  %v461_v31 = vpop.f32.mrf.mxu0 }
  0xca   : > { %v1138_v30 = vadd.f32 %v1062_v27, %v820_v25  ;;  %v462_v34 = vadd.f32 %v2060_v56, %v461_v31  ;;  %v747_v35 = vpop.f32.mrf.mxu1 }
  0xcc   : > { %1170 = vst [vmem:[%s2073_s27 + $0x18] sm:$0xff] %v1138_v30  ;;  %500 = vmatmul.bf16.gmra.mxu0 %v1743_v28  ;;  %1124 = vmatmul.bf16.gmra.mxu3 %v1795_v29  ;;  %v821_v36 = vadd.f32 %v747_v35, %v462_v34 }
  0xcd   : > { %786 = vmatmul.bf16.gmra.mxu1 %v1767_v32 }
  0xce   : > { %1104 = vmatmul.bf16.gmra.mxu2 %v1791_v33 }
  0xcf   : > { %v2097_v37 = vpop.f32.mrf.mxu3 }
  0xd1   : > { %v1065_v38 = vpop.f32.mrf.mxu2  ;;  %v463_v40 = vpop.f32.mrf.mxu0 }
  0xd2   : > { %v1139_v39 = vadd.f32 %v1065_v38, %v821_v36  ;;  %v749_v41 = vpop.f32.mrf.mxu1  ;;  %v464_v42 = vadd.f32 %v2060_v56, %v463_v40 }
  0xd4   : > { %1171 = vst [vmem:[%s2073_s27 + $0x20] sm:$0xff] %v1139_v39  ;;  %v822_v43 = vadd.f32 %v749_v41, %v464_v42 }
  0xd7   : > { %v2101_v44 = vpop.f32.mrf.mxu3 }
  0xd9   : > { %v1067_v45 = vpop.f32.mrf.mxu2  ;;  %v466_v49 = vpop.f32.mrf.mxu0 }
  0xda   : > { %v1140_v48 = vadd.f32 %v1067_v45, %v822_v43  ;;  %v467_v52 = vadd.f32 %v2060_v56, %v466_v49  ;;  %v752_v53 = vpop.f32.mrf.mxu1 }
  0xdc   : > { %1172 = vst [vmem:[%s2073_s27 + $0x28] sm:$0xff] %v1140_v48  ;;  %505 = vmatmul.bf16.gmra.mxu0 %v1744_v46  ;;  %1129 = vmatmul.bf16.gmra.mxu3 %v1796_v47  ;;  %v823_v54 = vadd.f32 %v752_v53, %v467_v52 }
  0xdd   : > { %791 = vmatmul.bf16.gmra.mxu1 %v1768_v50 }
  0xde   : > { %1109 = vmatmul.bf16.gmra.mxu2 %v1792_v51 }
  0xdf   : > { %v2109_v55 = vpop.f32.mrf.mxu3 }
  0xe1   : > { %v1070_v57 = vpop.f32.mrf.mxu2  ;;  %v468_v59 = vpop.f32.mrf.mxu0 }
  0xe2   : > { %v1141_v58 = vadd.f32 %v1070_v57, %v823_v54  ;;  %v754_v60 = vpop.f32.mrf.mxu1  ;;  %v469_v61 = vadd.f32 %v2060_v56, %v468_v59 }
  0xe4   : > { %1173 = vst [vmem:[%s2073_s27 + $0x30] sm:$0xff] %v1141_v58  ;;  %v824_v62 = vadd.f32 %v754_v60, %v469_v61 }
  0xe7   : > { %v2113_v63 = vpop.f32.mrf.mxu3 }
  0xe9   : > { %v1072_v0 = vpop.f32.mrf.mxu2  ;;  %v471_v3 = vpop.f32.mrf.mxu0 }
  0xea   : > { %v1142_v2 = vadd.f32 %v1072_v0, %v824_v62  ;;  %v472_v4 = vadd.f32 %v2060_v56, %v471_v3  ;;  %v757_v5 = vpop.f32.mrf.mxu1 }
  0xec   : > { %1174 = vst [vmem:[%s2073_s27 + $0x38] sm:$0xff] %v1142_v2  ;;  %v825_v6 = vadd.f32 %v757_v5, %v472_v4 }
  0xef   : > { %v2117_v7 = vpop.f32.mrf.mxu3 }
  0xf1   : > { %v1075_v9 = vpop.f32.mrf.mxu2  ;;  %v473_v11 = vpop.f32.mrf.mxu0 }
  0xf2   : > { %v1143_v10 = vadd.f32 %v1075_v9, %v825_v6  ;;  %v759_v12 = vpop.f32.mrf.mxu1  ;;  %v474_v13 = vadd.f32 %v2060_v56, %v473_v11  ;;  %v512_v9 = vadd.f32 %v2060_v56, %v2068_v1 }
  0xf4   : > { %1175 = vst [vmem:[%s2073_s27 + $0x40] sm:$0xff] %v1143_v10  ;;  %v826_v14 = vadd.f32 %v759_v12, %v474_v13  ;;  %v841_v11 = vadd.f32 %v2117_v7, %v512_v9 }
  0xf7   : > { %v2121_v15 = vpop.f32.mrf.mxu3 }
  0xf9   : > { %v1077_v16 = vpop.f32.mrf.mxu2  ;;  %v476_v18 = vpop.f32.mrf.mxu0 }
  0xfa   : > { %v1144_v17 = vadd.f32 %v1077_v16, %v826_v14  ;;  %v477_v20 = vadd.f32 %v2060_v56, %v476_v18  ;;  %v762_v21 = vpop.f32.mrf.mxu1 }
  0xfc   : > { %1176 = vst [vmem:[%s2073_s27 + $0x48] sm:$0xff] %v1144_v17  ;;  %v827_v22 = vadd.f32 %v762_v21, %v477_v20  ;;  %v514_v21 = vadd.f32 %v2060_v56, %v2077_v8 }
  0xfe   : > { %v842_v1 = vadd.f32 %v2121_v15, %v514_v21  ;;  %v529_v21 = vadd.f32 %v2060_v56, %v2113_v63 }
  0xff   : > { %v2125_v23 = vpop.f32.mrf.mxu3 }
 0x101   : > { %v1080_v24 = vpop.f32.mrf.mxu2  ;;  %v478_v27 = vpop.f32.mrf.mxu0 }
 0x102   : > { %v1145_v25 = vadd.f32 %v1080_v24, %v827_v22  ;;  %v764_v28 = vpop.f32.mrf.mxu1  ;;  %v479_v29 = vadd.f32 %v2060_v56, %v478_v27 }
 0x104   : > { %1177 = vst [vmem:[%s2073_s27 + $0x50] sm:$0xff] %v1145_v25  ;;  %v828_v30 = vadd.f32 %v764_v28, %v479_v29 }
 0x107   : > { %v2129_v31 = vpop.f32.mrf.mxu3 }
 0x109   : > { %v1082_v32 = vpop.f32.mrf.mxu2  ;;  %v481_v34 = vpop.f32.mrf.mxu0 }
 0x10a   : > { %v1146_v33 = vadd.f32 %v1082_v32, %v828_v30  ;;  %v482_v35 = vadd.f32 %v2060_v56, %v481_v34  ;;  %v767_v36 = vpop.f32.mrf.mxu1  ;;  %v517_v32 = vadd.f32 %v2060_v56, %v2085_v19 }
 0x10c   : > { %1178 = vst [vmem:[%s2073_s27 + $0x58] sm:$0xff] %v1146_v33  ;;  %v829_v38 = vadd.f32 %v767_v36, %v482_v35  ;;  %v843_v8 = vadd.f32 %v2125_v23, %v517_v32 }
 0x10f   : > { %v2133_v39 = vpop.f32.mrf.mxu3 }
 0x111   : > { %v1085_v40 = vpop.f32.mrf.mxu2  ;;  %v483_v42 = vpop.f32.mrf.mxu0 }
 0x112   : > { %v1147_v41 = vadd.f32 %v1085_v40, %v829_v38  ;;  %v769_v43 = vpop.f32.mrf.mxu1  ;;  %v484_v45 = vadd.f32 %v2060_v56, %v483_v42  ;;  %v519_v42 = vadd.f32 %v2060_v56, %v2089_v26 }
 0x114   : > { %1179 = vst [vmem:[%s2073_s27 + $0x60] sm:$0xff] %v1147_v41  ;;  %v830_v46 = vadd.f32 %v769_v43, %v484_v45  ;;  %v844_v19 = vadd.f32 %v2129_v31, %v519_v42 }
 0x117   : > { %v2137_v47 = vpop.f32.mrf.mxu3 }
 0x119   : > { %v1087_v48 = vpop.f32.mrf.mxu2  ;;  %v486_v50 = vpop.f32.mrf.mxu0 }
 0x11a   : > { %v1148_v49 = vadd.f32 %v1087_v48, %v830_v46  ;;  %v487_v51 = vadd.f32 %v2060_v56, %v486_v50  ;;  %v772_v52 = vpop.f32.mrf.mxu1 }
 0x11c   : > { %1180 = vst [vmem:[%s2073_s27 + $0x68] sm:$0xff] %v1148_v49  ;;  %v831_v53 = vadd.f32 %v772_v52, %v487_v51  ;;  %v522_v52 = vadd.f32 %v2060_v56, %v2097_v37 }
 0x11e   : > { %v845_v26 = vadd.f32 %v2133_v39, %v522_v52 }
 0x11f   : > { %v2141_v54 = vpop.f32.mrf.mxu3 }
 0x121   : > { %v1090_v57 = vpop.f32.mrf.mxu2  ;;  %v488_v59 = vpop.f32.mrf.mxu0 }
 0x122   : > { %v1149_v58 = vadd.f32 %v1090_v57, %v831_v53  ;;  %v774_v60 = vpop.f32.mrf.mxu1  ;;  %v489_v61 = vadd.f32 %v2060_v56, %v488_v59 }
 0x124   : > { %1181 = vst [vmem:[%s2073_s27 + $0x70] sm:$0xff] %v1149_v58  ;;  %v832_v62 = vadd.f32 %v774_v60, %v489_v61 }
 0x127   : > { %v2145_v0 = vpop.f32.mrf.mxu3 }
 0x129   : > { %v1092_v2 = vpop.f32.mrf.mxu2  ;;  %v491_v4 = vpop.f32.mrf.mxu0 }
 0x12a   : > { %v1150_v3 = vadd.f32 %v1092_v2, %v832_v62  ;;  %v492_v5 = vadd.f32 %v2060_v56, %v491_v4  ;;  %v777_v6 = vpop.f32.mrf.mxu1  ;;  %v524_v2 = vadd.f32 %v2060_v56, %v2101_v44 }
 0x12c   : > { %1182 = vst [vmem:[%s2073_s27 + $0x78] sm:$0xff] %v1150_v3  ;;  %v833_v10 = vadd.f32 %v777_v6, %v492_v5  ;;  %v846_v37 = vadd.f32 %v2137_v47, %v524_v2 }
 0x12f   : > { %v1115_v12 = vpop.f32.mrf.mxu3 }
 0x130   : > { %v1159_v14 = vadd.f32 %v1115_v12, %v841_v11  ;;  %v527_v11 = vadd.f32 %v2060_v56, %v2109_v55  ;;  %v848_v55 = vadd.f32 %v2145_v0, %v529_v21 }
 0x131   : > { %v1095_v13 = vpop.f32.mrf.mxu2  ;;  %v493_v17 = vpop.f32.mrf.mxu0 }
 0x132   : > { %v1151_v16 = vadd.f32 %v1095_v13, %v833_v10  ;;  %1191 = vst [vmem:[%s2073_s27 + $0xc0] sm:$0xff] %v1159_v14  ;;  %v779_v18 = vpop.f32.mrf.mxu1  ;;  %v494_v20 = vadd.f32 %v2060_v56, %v493_v17  ;;  %v847_v44 = vadd.f32 %v2141_v54, %v527_v11 }
 0x134   : > { %1183 = vst [vmem:[%s2073_s27 + $0x80] sm:$0xff] %v1151_v16  ;;  %v834_v22 = vadd.f32 %v779_v18, %v494_v20 }
 0x137   : > { %v1117_v24 = vpop.f32.mrf.mxu3 }
 0x138   : > { %v1160_v25 = vadd.f32 %v1117_v24, %v842_v1 }
 0x139   : > { %v1097_v7 = vpop.f32.mrf.mxu2  ;;  %v496_v28 = vpop.f32.mrf.mxu0 }
 0x13a   : > { %v1152_v27 = vadd.f32 %v1097_v7, %v834_v22  ;;  %1192 = vst [vmem:[%s2073_s27 + $0xc8] sm:$0xff] %v1160_v25  ;;  %v497_v29 = vadd.f32 %v2060_v56, %v496_v28  ;;  %v782_v30 = vpop.f32.mrf.mxu1 }
 0x13c   : > { %1184 = vst [vmem:[%s2073_s27 + $0x88] sm:$0xff] %v1152_v27  ;;  %v835_v33 = vadd.f32 %v782_v30, %v497_v29 }
 0x13f   : > { %v1120_v15 = vpop.f32.mrf.mxu3 }
 0x140   : > { %v1161_v35 = vadd.f32 %v1120_v15, %v843_v8 }
 0x141   : > { %v1100_v34 = vpop.f32.mrf.mxu2  ;;  %v498_v38 = vpop.f32.mrf.mxu0 }
 0x142   : > { %v1153_v36 = vadd.f32 %v1100_v34, %v835_v33  ;;  %1193 = vst [vmem:[%s2073_s27 + $0xd0] sm:$0xff] %v1161_v35  ;;  %v784_v40 = vpop.f32.mrf.mxu1  ;;  %v499_v41 = vadd.f32 %v2060_v56, %v498_v38 }
 0x144   : > { %1185 = vst [vmem:[%s2073_s27 + $0x90] sm:$0xff] %v1153_v36  ;;  %v836_v43 = vadd.f32 %v784_v40, %v499_v41 }
 0x147   : > { %v1122_v45 = vpop.f32.mrf.mxu3 }
 0x148   : > { %v1162_v46 = vadd.f32 %v1122_v45, %v844_v19 }
 0x149   : > { %v1102_v23 = vpop.f32.mrf.mxu2  ;;  %v501_v49 = vpop.f32.mrf.mxu0 }
 0x14a   : > { %v1154_v48 = vadd.f32 %v1102_v23, %v836_v43  ;;  %1194 = vst [vmem:[%s2073_s27 + $0xd8] sm:$0xff] %v1162_v46  ;;  %v502_v50 = vadd.f32 %v2060_v56, %v501_v49  ;;  %v787_v51 = vpop.f32.mrf.mxu1 }
 0x14c   : > { %1186 = vst [vmem:[%s2073_s27 + $0x98] sm:$0xff] %v1154_v48  ;;  %v837_v53 = vadd.f32 %v787_v51, %v502_v50 }
 0x14f   : > { %v1125_v31 = vpop.f32.mrf.mxu3 }
 0x150   : > { %v1163_v58 = vadd.f32 %v1125_v31, %v845_v26 }
 0x151   : > { %v1105_v57 = vpop.f32.mrf.mxu2  ;;  %v503_v60 = vpop.f32.mrf.mxu0 }
 0x152   : > { %v1155_v59 = vadd.f32 %v1105_v57, %v837_v53  ;;  %1195 = vst [vmem:[%s2073_s27 + $0xe0] sm:$0xff] %v1163_v58  ;;  %v789_v61 = vpop.f32.mrf.mxu1  ;;  %v504_v62 = vadd.f32 %v2060_v56, %v503_v60 }
 0x154   : > { %1187 = vst [vmem:[%s2073_s27 + $0xa0] sm:$0xff] %v1155_v59  ;;  %v838_v3 = vadd.f32 %v789_v61, %v504_v62 }
 0x157   : > { %v1127_v4 = vpop.f32.mrf.mxu3 }
 0x158   : > { %v1164_v5 = vadd.f32 %v1127_v4, %v846_v37 }
 0x159   : > { %v1107_v39 = vpop.f32.mrf.mxu2  ;;  %v506_v9 = vpop.f32.mrf.mxu0 }
 0x15a   : > { %v1156_v6 = vadd.f32 %v1107_v39, %v838_v3  ;;  %1196 = vst [vmem:[%s2073_s27 + $0xe8] sm:$0xff] %v1164_v5  ;;  %v507_v10 = vadd.f32 %v2060_v56, %v506_v9  ;;  %v792_v12 = vpop.f32.mrf.mxu1 }
 0x15c   : > { %1188 = vst [vmem:[%s2073_s27 + $0xa8] sm:$0xff] %v1156_v6  ;;  %v839_v13 = vadd.f32 %v792_v12, %v507_v10 }
 0x15f   : > { %v1130_v47 = vpop.f32.mrf.mxu3 }
 0x160   : > { %v1165_v16 = vadd.f32 %v1130_v47, %v847_v44 }
 0x161   : > { %v1110_v14 = vpop.f32.mrf.mxu2  ;;  %v508_v18 = vpop.f32.mrf.mxu0 }
 0x162   : > { %v1157_v17 = vadd.f32 %v1110_v14, %v839_v13  ;;  %1197 = vst [vmem:[%s2073_s27 + $0xf0] sm:$0xff] %v1165_v16  ;;  %v509_v20 = vadd.f32 %v2060_v56, %v508_v18  ;;  %v794_v1 = vpop.f32.mrf.mxu1 }
 0x164   : > { %1189 = vst [vmem:[%s2073_s27 + $0xb0] sm:$0xff] %v1157_v17  ;;  %v840_v22 = vadd.f32 %v794_v1, %v509_v20 }
 0x167   : > { %v1132_v24 = vpop.f32.mrf.mxu3 }
 0x168   : > { %v1166_v7 = vadd.f32 %v1132_v24, %v848_v55 }
 0x169   : > { %v1112_v54 = vpop.f32.mrf.mxu2 }
 0x16a   : > { %v1158_v25 = vadd.f32 %v1112_v54, %v840_v22  ;;  %1198 = vst [vmem:[%s2073_s27 + $0xf8] sm:$0xff] %v1166_v7 }
 0x16c   : > { %1190 = vst [vmem:[%s2073_s27 + $0xb8] sm:$0xff] %v1158_v25 }
 0x16d PF: > { %s13_s14 = sadd.s32 1, %s1877_s14   ;;  %s2209_s12 = smov %s1873_s13 }
 0x16e   : > { %p10_p5 = scmp.ge.s32.totalorder %s13_s14, 4   ;;  %s2210_s13 = smov %s2212_s15 }
 0x170   :  { %12 = sbr.rel (!%p10_p5) target bundleno = 2 (0x2), region = 73 }

</bundles_post_ra>
